<compile_context>
chip_gen: v5e
topology: v5e:2x2
jax: 0.10.0
libtpu: 0.0.40
codegen_flags: <defaults>
</compile_context>

<pallas_src>
import jax
import jax.numpy as jnp
import numpy as np
from jax.experimental import pallas as pl
from jax.experimental.pallas import tpu as pltpu


def _round_up(x: int, m: int) -> int:
    return ((x + m - 1) // m) * m


def _vmem_capacity_bytes() -> int:
    """Physical VMEM per TensorCore; falls back to the smallest (v7x) value."""
    try:
        return int(pltpu.get_tpu_info().vmem_capacity_bytes)
    except Exception:
        return 64 << 20


# ----------------------------------------------------------------------------
# Propagation kernel
#   sum_out = run_sum + G @ emb ;  nxt = (G @ emb).astype(bf16)
# ----------------------------------------------------------------------------
def _make_propagate_kernel(emb_resident: bool, tk: int):
    def kernel(g_ref, e_ref, sum_ref, sum_out_ref, nxt_ref, acc_ref):
        k = pl.program_id(1)
        last = pl.num_programs(1) - 1

        if emb_resident:
            # Embedding is fully VMEM-resident; slice the K block locally.
            start = pl.multiple_of(k * tk, tk)
            e_blk = e_ref[pl.ds(start, tk), :]
        else:
            e_blk = e_ref[...]

        part = jnp.dot(g_ref[...], e_blk, preferred_element_type=jnp.float32)

        @pl.when(k == 0)
        def _():
            acc_ref[...] = jnp.zeros_like(acc_ref)

        @pl.when(k != last)
        def _():
            acc_ref[...] += part

        @pl.when(k == last)
        def _():
            layer = acc_ref[...] + part              # avoid acc store+reload
            sum_out_ref[...] = sum_ref[...] + layer  # fused running mean term
            nxt_ref[...] = layer.astype(nxt_ref.dtype)  # fused bf16 re-cast

    return kernel


def _choose_tile(n_pad: int) -> int:
    """Largest MXU-friendly tile that divides n_pad while leaving >= 2 row
    blocks (so v7x megacore can split the 'parallel' axis across 2 TCs)."""
    for t in (1024, 512, 256):
        if n_pad % t == 0 and n_pad // t >= 2:
            return t
    return 128


def _plan_propagation(n_pad: int, d_pad: int, tm: int, tk: int):
    """Decide resident-vs-streamed embedding and the VMEM limit per chip."""
    cap = _vmem_capacity_bytes()
    budget = min(cap * 3 // 4, 100 << 20)     # ~48 MiB on v7x, ~96 MiB on v5e/v6e
    emb_bytes = n_pad * d_pad * 2             # bf16 embedding matrix
    fixed = (3 * tm * tk * 2                  # graph tile, up to triple-buffered
             + 2 * tm * d_pad * 4             # running-sum input (double-buffered)
             + 2 * tm * d_pad * 4             # running-sum output
             + 2 * tm * d_pad * 2             # bf16 next-layer output
             + tm * d_pad * 4)                # f32 accumulator scratch
    emb_resident = fixed + 2 * emb_bytes + (4 << 20) <= budget
    need = fixed + (2 * emb_bytes if emb_resident else 2 * tk * d_pad * 2)
    vmem_limit = max(32 << 20, min(budget, need + (8 << 20)))
    return emb_resident, vmem_limit


def _propagate_layer(g_bf16, emb_bf16, run_sum, *, tm, tk,
                     emb_resident, vmem_limit):
    n_pad, d_pad = emb_bf16.shape
    grid = (n_pad // tm, n_pad // tk)

    # Graph is the dominant streaming operand; deepen its pipeline only when
    # the K axis actually streams (keeps the small-N test path trivial).
    if grid[1] >= 3:
        g_spec = pl.BlockSpec((tm, tk), lambda i, k: (i, k),
                              pipeline_mode=pl.Buffered(3))
    else:
        g_spec = pl.BlockSpec((tm, tk), lambda i, k: (i, k))

    if emb_resident:
        # Constant block index => DMA'd into VMEM once, no per-row-tile re-read.
        e_spec = pl.BlockSpec((n_pad, d_pad), lambda i, k: (0, 0))
        emb_traffic = n_pad * d_pad * 2
    else:
        e_spec = pl.BlockSpec((tk, d_pad), lambda i, k: (k, 0))
        emb_traffic = grid[0] * n_pad * d_pad * 2   # re-read once per row tile

    bytes_accessed = (n_pad * n_pad * 2             # bf16 graph
                      + emb_traffic                 # bf16 embedding reads
                      + 2 * n_pad * d_pad * 4       # f32 running sum in + out
                      + n_pad * d_pad * 2)          # bf16 next-layer output

    return pl.pallas_call(
        _make_propagate_kernel(emb_resident, tk),
        out_shape=(jax.ShapeDtypeStruct((n_pad, d_pad), jnp.float32),
                   jax.ShapeDtypeStruct((n_pad, d_pad), jnp.bfloat16)),
        grid_spec=pltpu.PrefetchScalarGridSpec(
            num_scalar_prefetch=0,
            grid=grid,
            in_specs=[g_spec,
                      e_spec,
                      pl.BlockSpec((tm, d_pad), lambda i, k: (i, 0))],
            out_specs=[pl.BlockSpec((tm, d_pad), lambda i, k: (i, 0)),
                       pl.BlockSpec((tm, d_pad), lambda i, k: (i, 0))],
            scratch_shapes=[pltpu.VMEM((tm, d_pad), jnp.float32)],
        ),
        compiler_params=pltpu.CompilerParams(
            dimension_semantics=("parallel", "arbitrary"),
            vmem_limit_bytes=vmem_limit,
        ),
        cost_estimate=pl.CostEstimate(
            flops=2 * n_pad * n_pad * d_pad,
            transcendentals=0,
            bytes_accessed=bytes_accessed,
        ),
        input_output_aliases={2: 0},   # running sum updated in place
    )(g_bf16, emb_bf16, run_sum)


def lightgcn_propagate(graph: jax.Array, emb0: jax.Array, n_layers: int) -> jax.Array:
    """light_out = mean([emb0, G@emb0, G^2@emb0, ...]) with bf16 MXU matmuls."""
    N, D = emb0.shape
    assert graph.shape == (N, N)

    d_pad = _round_up(D, 128)                 # lane-dense embedding dim
    n_pad = _round_up(N, 128)
    tm = tk = _choose_tile(n_pad)
    emb_resident, vmem_limit = _plan_propagation(n_pad, d_pad, tm, tk)

    g_bf16 = jnp.zeros((n_pad, n_pad), jnp.bfloat16).at[:N, :N].set(
        graph.astype(jnp.bfloat16))
    emb_f32 = jnp.zeros((n_pad, d_pad), jnp.float32).at[:N, :D].set(
        emb0.astype(jnp.float32))

    # NOTE: each layer's bf16 input is the previous layer's f32 output
    # re-quantized inside the kernel epilogue; error compounds with n_layers
    # (same numerics as a plain bf16-MXU implementation).
    run_sum = emb_f32                          # layer-0 term of the mean (f32)
    cur_bf16 = emb_f32.astype(jnp.bfloat16)
    for _ in range(n_layers):
        run_sum, cur_bf16 = _propagate_layer(
            g_bf16, cur_bf16, run_sum, tm=tm, tk=tk,
            emb_resident=emb_resident, vmem_limit=vmem_limit)
    light_out = run_sum * (1.0 / float(n_layers + 1))
    return light_out[:N, :D]


# ----------------------------------------------------------------------------
# Scoring kernel: gamma = sum(users_emb * items_emb, -1)
# ----------------------------------------------------------------------------
def score_kernel(ut_ref, it_ref, o_ref):
    """Transposed [D_pad, TB] tiles -> lane-dense gamma row [1, TB]."""
    prod = ut_ref[...] * it_ref[...]
    o_ref[...] = jnp.sum(prod, axis=0, keepdims=True)


def lightgcn_score(users_emb: jax.Array, items_emb: jax.Array, *, tb: int = 4096):
    B, D = users_emb.shape
    d_pad = _round_up(D, 8)
    if B <= tb:
        b_pad = _round_up(B, 128)
        tb = b_pad
    else:
        b_pad = _round_up(B, tb)
    ut = jnp.zeros((d_pad, b_pad), jnp.float32).at[:D, :B].set(users_emb.T)
    it = jnp.zeros((d_pad, b_pad), jnp.float32).at[:D, :B].set(items_emb.T)
    out = pl.pallas_call(
        score_kernel,
        out_shape=jax.ShapeDtypeStruct((1, b_pad), jnp.float32),
        grid=(b_pad // tb,),
        in_specs=[pl.BlockSpec((d_pad, tb), lambda b: (0, b)),
                  pl.BlockSpec((d_pad, tb), lambda b: (0, b))],
        out_specs=pl.BlockSpec((1, tb), lambda b: (0, b)),
        compiler_params=pltpu.CompilerParams(
            dimension_semantics=("parallel",)),
    )(ut, it)
    return out[0, :B]


def lightgcn_forward(graph, user_emb_w, item_emb_w, users, items, n_layers):
    """Equivalent of LightGCN.forward(users, items)."""
    n_users = user_emb_w.shape[0]
    all_emb0 = jnp.concatenate([user_emb_w, item_emb_w], axis=0)       # [N, D]
    light_out = lightgcn_propagate(graph, all_emb0, n_layers)          # [N, D]
    all_users = light_out[:n_users]
    all_items = light_out[n_users:]
    # Row gathers / transposes stay in JAX glue (negligible at this batch size).
    users_emb = all_users[users]
    items_emb = all_items[items]
    return lightgcn_score(users_emb, items_emb)                        # [B]


# ----------------------------------------------------------------------------
# Deterministic parameter / graph construction
# ----------------------------------------------------------------------------
def xavier_uniform(key, shape, gain=0.1, dtype=jnp.float32):
    fan_out, fan_in = shape  # torch convention for 2-D: fan_in = size(1)
    a = gain * np.sqrt(6.0 / (fan_in + fan_out))
    return jax.random.uniform(key, shape, dtype=dtype, minval=-a, maxval=a)


def build_normalized_graph(key, n_users, n_items, density=0.15):
    """Dense symmetric-normalized bipartite adjacency D^-1/2 A D^-1/2."""
    N = n_users + n_items
    r = (jax.random.uniform(key, (n_users, n_items)) < density).astype(jnp.float32)
    A = jnp.zeros((N, N), jnp.float32)
    A = A.at[:n_users, n_users:].set(r)
    A = A.at[n_users:, :n_users].set(r.T)
    deg = jnp.sum(A, axis=1)
    d_inv_sqrt = jnp.where(deg > 0, 1.0 / jnp.sqrt(jnp.maximum(deg, 1e-12)), 0.0)
    return A * d_inv_sqrt[:, None] * d_inv_sqrt[None, :]


# ----------------------------------------------------------------------------
# Main
# ----------------------------------------------------------------------------
if __name__ == "__main__":
    # Small synthetic config (cfg.emb_dim, cfg.n_layers, dataset sizes).
    n_users, n_items = 24, 40          # N = 64
    emb_dim = 32
    n_layers = 3
    batch = 8

    key = jax.random.PRNGKey(0)
    k_u, k_i, k_g, k_uu, k_ii = jax.random.split(key, 5)

    user_emb_w = xavier_uniform(k_u, (n_users, emb_dim), gain=0.1)
    item_emb_w = xavier_uniform(k_i, (n_items, emb_dim), gain=0.1)
    graph = build_normalized_graph(k_g, n_users, n_items)

    users = jax.random.randint(k_uu, (batch,), 0, n_users, dtype=jnp.int32)
    items = jax.random.randint(k_ii, (batch,), 0, n_items, dtype=jnp.int32)

    gamma = lightgcn_forward(graph, user_emb_w, item_emb_w, users, items, n_layers)
    gamma = jax.block_until_ready(gamma)

    # Pure-JAX f32 reference. Kernel matmuls run bf16-in/f32-acc on the MXU,
    # so tolerances are relaxed accordingly.
    all_emb = jnp.concatenate([user_emb_w, item_emb_w], axis=0)
    embs = [all_emb]
    cur = all_emb
    for _ in range(n_layers):
        cur = graph @ cur
        embs.append(cur)
    light_out = jnp.mean(jnp.stack(embs, axis=1), axis=1)
    ref_u, ref_i = light_out[:n_users], light_out[n_users:]
    gamma_ref = jnp.sum(ref_u[users] * ref_i[items], axis=1)

    np.testing.assert_allclose(np.asarray(gamma), np.asarray(gamma_ref),
                               rtol=5e-2, atol=1e-3)

    # TODO(synk): sparse-graph dropout (__dropout_x) and A_split partitioning are
    # training/data-layout features with no dense-kernel equivalent; graph is dense here.
    print("KERNEL_OK")
</pallas_src>

<mosaic_0001>
module attributes {stable_mosaic.version = 11 : i64} {
  func.func @kernel(%arg0: i32, %arg1: i32, %arg2: memref<128x128xbf16, #tpu.memory_space<vmem>>, %arg3: memref<128x128xbf16, #tpu.memory_space<vmem>>, %arg4: memref<128x128xf32, #tpu.memory_space<vmem>>, %arg5: memref<128x128xf32, #tpu.memory_space<vmem>>, %arg6: memref<128x128xbf16, #tpu.memory_space<vmem>>, %arg7: memref<128x128xf32, #tpu.memory_space<vmem>>) attributes {dimension_semantics = [#tpu.dimension_semantics<parallel>, #tpu.dimension_semantics<arbitrary>], iteration_bounds = array<i64: 1, 1>, scalar_prefetch = 0 : i64, scratch_operands = 1 : i64, tpu.core_type = #tpu.core_type<tc>, window_params = [{transform_indices = @transform_0, window_bounds = array<i64: 128, 128>}, {pipeline_mode = #tpu.pipeline_mode<synchronous>, transform_indices = @transform_1, window_bounds = array<i64: 128, 128>}, {transform_indices = @transform_2, window_bounds = array<i64: 128, 128>}, {transform_indices = @transform_3, window_bounds = array<i64: 128, 128>}, {transform_indices = @transform_4, window_bounds = array<i64: 128, 128>}]} {
    %c128_i32 = arith.constant 128 : i32
    %0 = arith.muli %arg1, %c128_i32 : i32
    %1 = tpu.assume_multiple %0, 128 : i32
    %2 = arith.index_cast %1 : i32 to index
    %c0 = arith.constant 0 : index
    %3 = vector.load %arg3[%2, %c0] : memref<128x128xbf16, #tpu.memory_space<vmem>>, vector<128x128xbf16>
    %c0_0 = arith.constant 0 : index
    %c0_1 = arith.constant 0 : index
    %4 = vector.load %arg2[%c0_0, %c0_1] : memref<128x128xbf16, #tpu.memory_space<vmem>>, vector<128x128xbf16>
    %cst = arith.constant dense<0.000000e+00> : vector<128x128xf32>
    %5 = tpu.matmul %4, %3, %cst {dimension_numbers = #tpu.dot_dimension_numbers<[1], [0], [0], [1], [0, 0, 1, 1], [], []>} : vector<128x128xbf16>, vector<128x128xbf16>, vector<128x128xf32> -> vector<128x128xf32>
    %c0_i32 = arith.constant 0 : i32
    %6 = arith.cmpi eq, %arg1, %c0_i32 : i32
    %7 = arith.extui %6 : i1 to i32
    %c0_i32_2 = arith.constant 0 : i32
    %8 = arith.cmpi ne, %7, %c0_i32_2 : i32
    scf.if %8 {
      %cst_7 = arith.constant 0.000000e+00 : f32
      %15 = vector.broadcast %cst_7 : f32 to vector<128x128xf32>
      %c0_8 = arith.constant 0 : index
      %c0_9 = arith.constant 0 : index
      %16 = vector.load %arg7[%c0_8, %c0_9] : memref<128x128xf32, #tpu.memory_space<vmem>>, vector<128x128xf32>
      tpu.vector_store %arg7[%c0_8, %c0_9], %15 {strides = array<i32>} : memref<128x128xf32, #tpu.memory_space<vmem>>, vector<128x128xf32>,
    } else {
    }
    %c0_i32_3 = arith.constant 0 : i32
    %9 = arith.cmpi ne, %arg1, %c0_i32_3 : i32
    %10 = arith.extui %9 : i1 to i32
    %c0_i32_4 = arith.constant 0 : i32
    %11 = arith.cmpi ne, %10, %c0_i32_4 : i32
    scf.if %11 {
      %c0_7 = arith.constant 0 : index
      %c0_8 = arith.constant 0 : index
      %15 = vector.load %arg7[%c0_7, %c0_8] : memref<128x128xf32, #tpu.memory_space<vmem>>, vector<128x128xf32>
      %16 = arith.addf %15, %5 : vector<128x128xf32>
      %c0_9 = arith.constant 0 : index
      %c0_10 = arith.constant 0 : index
      %17 = vector.load %arg7[%c0_9, %c0_10] : memref<128x128xf32, #tpu.memory_space<vmem>>, vector<128x128xf32>
      tpu.vector_store %arg7[%c0_9, %c0_10], %16 {strides = array<i32>} : memref<128x128xf32, #tpu.memory_space<vmem>>, vector<128x128xf32>,
    } else {
    }
    %c0_i32_5 = arith.constant 0 : i32
    %12 = arith.cmpi eq, %arg1, %c0_i32_5 : i32
    %13 = arith.extui %12 : i1 to i32
    %c0_i32_6 = arith.constant 0 : i32
    %14 = arith.cmpi ne, %13, %c0_i32_6 : i32
    scf.if %14 {
      %c0_7 = arith.constant 0 : index
      %c0_8 = arith.constant 0 : index
      %15 = vector.load %arg7[%c0_7, %c0_8] : memref<128x128xf32, #tpu.memory_space<vmem>>, vector<128x128xf32>
      %16 = arith.addf %15, %5 : vector<128x128xf32>
      %c0_9 = arith.constant 0 : index
      %c0_10 = arith.constant 0 : index
      %17 = vector.load %arg4[%c0_9, %c0_10] : memref<128x128xf32, #tpu.memory_space<vmem>>, vector<128x128xf32>
      %18 = arith.addf %17, %16 : vector<128x128xf32>
      %c0_11 = arith.constant 0 : index
      %c0_12 = arith.constant 0 : index
      %19 = vector.load %arg5[%c0_11, %c0_12] : memref<128x128xf32, #tpu.memory_space<vmem>>, vector<128x128xf32>
      tpu.vector_store %arg5[%c0_11, %c0_12], %18 {strides = array<i32>} : memref<128x128xf32, #tpu.memory_space<vmem>>, vector<128x128xf32>,
      %20 = arith.truncf %16 : vector<128x128xf32> to vector<128x128xbf16>
      %c0_13 = arith.constant 0 : index
      %c0_14 = arith.constant 0 : index
      %21 = vector.load %arg6[%c0_13, %c0_14] : memref<128x128xbf16, #tpu.memory_space<vmem>>, vector<128x128xbf16>
      tpu.vector_store %arg6[%c0_13, %c0_14], %20 {strides = array<i32>} : memref<128x128xbf16, #tpu.memory_space<vmem>>, vector<128x128xbf16>,
    } else {
    }
    return
  }
  func.func @transform_0(%arg0: i32, %arg1: i32) -> (i32, i32) {
    %c0_i32 = arith.constant 0 : i32
    return %arg0, %arg1 : i32, i32
  }
  func.func @transform_1(%arg0: i32, %arg1: i32) -> (i32, i32) {
    %c0_i32 = arith.constant 0 : i32
    %c0_i32_0 = arith.constant 0 : i32
    %c0_i32_1 = arith.constant 0 : i32
    return %c0_i32, %c0_i32_0 : i32, i32
  }
  func.func @transform_2(%arg0: i32, %arg1: i32) -> (i32, i32) {
    %c0_i32 = arith.constant 0 : i32
    %c0_i32_0 = arith.constant 0 : i32
    return %arg0, %c0_i32 : i32, i32
  }
  func.func @transform_3(%arg0: i32, %arg1: i32) -> (i32, i32) {
    %c0_i32 = arith.constant 0 : i32
    %c0_i32_0 = arith.constant 0 : i32
    return %arg0, %c0_i32 : i32, i32
  }
  func.func @transform_4(%arg0: i32, %arg1: i32) -> (i32, i32) {
    %c0_i32 = arith.constant 0 : i32
    %c0_i32_0 = arith.constant 0 : i32
    return %arg0, %c0_i32 : i32, i32
  }
}

</mosaic_0001>

<bundles_post_ra>
// kernel: tpu_custom_call.1
= control target key start
LH: loop header
LB: loop body
LE: loop exit
PB: predicated region body
PF: predicated region fallthrough
CT: control target
= control target key end

     0   :  { %10 = vsyncpa [#allocation4], 0  ;;  %s773_s0 = inlined_call_operand.vmem [shape: bf16[128,128], index: 0, kind: input, shape index: {}]   ;;  %s774_s1 = inlined_call_operand.vmem [shape: bf16[128,128], index: 1, kind: input, shape index: {}]   ;;  %s775_s2 = inlined_call_operand.hbm [shape: f32[128,128], index: 2, kind: input, shape index: {}, may-alias: {2,3}]   ;;  %s776_s3 = inlined_call_operand.hbm [shape: f32[128,128], index: 3, kind: output, shape index: {0}, may-alias: {2,3}]   ;;  %s777_s4 = inlined_call_operand.hbm [shape: bf16[128,128], index: 4, kind: output, shape index: {1}]  }
   0x1   :  { %11 = vsyncpa [#allocation5], 0 }
   0x2   :  { %12 = vsyncpa [#allocation8], 0  ;;  %s21_s17 = sshll.u32 %s775_s2, 4  ;;  %s678_s18 = smov [#allocation3]   ;;  %s22_s17 = int_to_ptr.hbm [resolvable:$true] %s21_s17 }
   0x3   :  { %s23_s19 = sshll.u32 %s678_s18, 4  ;;  %s679_s20 = smov 128   ;;  %s24_s19 = int_to_ptr.vmem [resolvable:$true] %s23_s19 }
   0x4   :  { %s680_s21 = smov 8  }
   0x5   :  { %29 = dma.hbm_to_vmem [thread:$0]  %s22_s17, 2048, %s24_s19, [#allocation4], %s679_s20, %s679_s20, %s680_s21  }
   0x6   :  { %672 = dma.done.wait [#allocation4], 2048  }
   0x7   :  { %673 = vsyncadd [#allocation4], 4294965248  ;;  %v513_v0 = vld [vmem:[%s774_s1 + $0x38] sm:$0xff]  ;;  %v512_v1 = vld [vmem:[%s774_s1 + $0x30] sm:$0xff]  ;;  %s409_s30 = sshll.u32 %s776_s3, 4  ;;  %s682_s5 = smov [#allocation7]   ;;  %s410_s30 = int_to_ptr.hbm [resolvable:$true] %s409_s30 }
   0x8   :  { %167 = vmatpush.bf16.msra.mxu0 %v513_v0  ;;  %569 = vmatpush.bf16.msra.mxu1 %v513_v0  ;;  %v511_v2 = vld [vmem:[%s774_s1 + $0x28] sm:$0xff]  ;;  %v510_v3 = vld [vmem:[%s774_s1 + $0x20] sm:$0xff]  ;;  %v509_v4 = vld [vmem:[%s774_s1 + $0x18] sm:$0xff]  ;;  %s420_s6 = sshll.u32 %s682_s5, 4  ;;  %s422_s9 = sshll.u32 %s777_s4, 4  ;;  %s421_s6 = int_to_ptr.vmem [resolvable:$true] %s420_s6  ;;  %s423_s9 = int_to_ptr.hbm [resolvable:$true] %s422_s9 }
   0x9   :  { %570 = vmatpush.bf16.msra.mxu2 %v513_v0  ;;  %571 = vmatpush.bf16.msra.mxu3 %v513_v0  ;;  %v508_v5 = vld [vmem:[%s774_s1 + $0x10] sm:$0xff]  ;;  %v507_v6 = vld [vmem:[%s774_s1 + $0x8] sm:$0xff]  ;;  %v506_v7 = vld [vmem:[%s774_s1] sm:$0xff]  ;;  %s683_s3 = smov 64   ;;  %s684_s10 = smov 4  }
   0xa   :  { %v514_v8 = vld [vmem:[%s773_s0] sm:$0xff]  ;;  %v516_v9 = vld [vmem:[%s773_s0 + $0x10] sm:$0xff]  ;;  %v515_v12 = vld [vmem:[%s773_s0 + $0x8] sm:$0xff] }
   0xb   :  { %v518_v10 = vld [vmem:[%s773_s0 + $0x20] sm:$0xff]  ;;  %v520_v11 = vld [vmem:[%s773_s0 + $0x30] sm:$0xff]  ;;  %v517_v13 = vld [vmem:[%s773_s0 + $0x18] sm:$0xff] }
   0xc   :  { %168 = vmatpush.bf16.msra.mxu0 %v512_v1  ;;  %572 = vmatpush.bf16.msra.mxu1 %v512_v1  ;;  %v519_v14 = vld [vmem:[%s773_s0 + $0x28] sm:$0xff]  ;;  %v521_v15 = vld [vmem:[%s773_s0 + $0x38] sm:$0xff]  ;;  %v323_v16 = vld [vmem:[#allocation3] sm:$0xff]  ;;  %s681_s0 = smov [#allocation6]  }
   0xd   :  { %573 = vmatpush.bf16.msra.mxu2 %v512_v1  ;;  %574 = vmatpush.bf16.msra.mxu3 %v512_v1  ;;  %v327_v17 = vld [vmem:[#allocation3 + $0x20] sm:$0xff]  ;;  %v324_v24 = vld [vmem:[#allocation3 + $0x8] sm:$0xff]  ;;  %v325_v40 = vld [vmem:[#allocation3 + $0x10] sm:$0xff]  ;;  %s407_s27 = sshll.u32 %s681_s0, 4  ;;  %s408_s27 = int_to_ptr.vmem [resolvable:$true] %s407_s27 }
   0xe   :  { %v331_v22 = vld [vmem:[#allocation3 + $0x40] sm:$0xff]  ;;  %v328_v27 = vld [vmem:[#allocation3 + $0x28] sm:$0xff]  ;;  %v329_v46 = vld [vmem:[#allocation3 + $0x30] sm:$0xff] }
   0xf   :  { %v335_v23 = vld [vmem:[#allocation3 + $0x60] sm:$0xff]  ;;  %v332_v36 = vld [vmem:[#allocation3 + $0x48] sm:$0xff]  ;;  %v333_v50 = vld [vmem:[#allocation3 + $0x50] sm:$0xff] }
  0x10   :  { %169 = vmatpush.bf16.msra.mxu0 %v511_v2  ;;  %575 = vmatpush.bf16.msra.mxu1 %v511_v2  ;;  %v336_v37 = vld [vmem:[#allocation3 + $0x68] sm:$0xff]  ;;  %v337_v51 = vld [vmem:[#allocation3 + $0x70] sm:$0xff]  ;;  %v326_v52 = vld [vmem:[#allocation3 + $0x18] sm:$0xff] }
  0x11   :  { %576 = vmatpush.bf16.msra.mxu2 %v511_v2  ;;  %577 = vmatpush.bf16.msra.mxu3 %v511_v2  ;;  %v330_v55 = vld [vmem:[#allocation3 + $0x38] sm:$0xff] }
  0x12   :  { %v334_v0 = vld [vmem:[#allocation3 + $0x58] sm:$0xff] }
  0x13   :  { %v338_v1 = vld [vmem:[#allocation3 + $0x78] sm:$0xff] }
  0x14   :  { %170 = vmatpush.bf16.msra.mxu0 %v510_v3  ;;  %578 = vmatpush.bf16.msra.mxu1 %v510_v3 }
  0x15   :  { %579 = vmatpush.bf16.msra.mxu2 %v510_v3  ;;  %580 = vmatpush.bf16.msra.mxu3 %v510_v3 }
  0x18   :  { %171 = vmatpush.bf16.msra.mxu0 %v509_v4  ;;  %581 = vmatpush.bf16.msra.mxu1 %v509_v4 }
  0x19   :  { %582 = vmatpush.bf16.msra.mxu2 %v509_v4  ;;  %583 = vmatpush.bf16.msra.mxu3 %v509_v4 }
  0x1c   :  { %172 = vmatpush.bf16.msra.mxu0 %v508_v5  ;;  %584 = vmatpush.bf16.msra.mxu1 %v508_v5 }
  0x1d   :  { %585 = vmatpush.bf16.msra.mxu2 %v508_v5  ;;  %586 = vmatpush.bf16.msra.mxu3 %v508_v5 }
  0x20   :  { %173 = vmatpush.bf16.msra.mxu0 %v507_v6  ;;  %587 = vmatpush.bf16.msra.mxu1 %v507_v6 }
  0x21   :  { %588 = vmatpush.bf16.msra.mxu2 %v507_v6  ;;  %589 = vmatpush.bf16.msra.mxu3 %v507_v6 }
  0x24   :  { %174 = vmatpush.bf16.msra.mxu0 %v506_v7  ;;  %590 = vmatpush.bf16.msra.mxu1 %v506_v7 }
  0x25   :  { %591 = vmatpush.bf16.msra.mxu2 %v506_v7  ;;  %592 = vmatpush.bf16.msra.mxu3 %v506_v7 }
  0x27   :  { %175 = vmatmul.bf16.vlgmr.msra.gmra.mxu0 %v514_v8  ;;  %185 = vmatmul.bf16.vlgmr.msra.gmra.mxu1 %v516_v9 }
  0x28   :  { %195 = vmatmul.bf16.vlgmr.msra.gmra.mxu2 %v518_v10  ;;  %205 = vmatmul.bf16.vlgmr.msra.gmra.mxu3 %v520_v11 }
  0x37   :  { %180 = vmatmul.bf16.gmra.mxu0 %v515_v12  ;;  %190 = vmatmul.bf16.gmra.mxu1 %v517_v13 }
  0x38   :  { %200 = vmatmul.bf16.gmra.mxu2 %v519_v14  ;;  %210 = vmatmul.bf16.gmra.mxu3 %v521_v15 }
  0xa4   :  { %v176_v18 = vpop.f32.mrf.mxu0  ;;  %v186_v19 = vpop.f32.mrf.mxu1 }
  0xa5   :  { %v339_v20 = vadd.f32 %v323_v16, %v176_v18  ;;  %v343_v21 = vadd.f32 %v327_v17, %v186_v19 }
  0xa7   :  { %355 = vst [vmem:[#allocation6] sm:$0xff] %v339_v20 }
  0xa8   :  { %359 = vst [vmem:[#allocation6 + $0x20] sm:$0xff] %v343_v21 }
  0xab   :  { %v196_v25 = vpop.f32.mrf.mxu2  ;;  %v206_v26 = vpop.f32.mrf.mxu3 }
  0xac   :  { %v347_v28 = vadd.f32 %v331_v22, %v196_v25  ;;  %v351_v29 = vadd.f32 %v335_v23, %v206_v26  ;;  %v178_v30 = vpop.f32.mrf.mxu0  ;;  %v188_v31 = vpop.f32.mrf.mxu1 }
  0xad   :  { %v340_v32 = vadd.f32 %v324_v24, %v178_v30  ;;  %v525_v33 = vpack.c.bf16 %v178_v30, %v176_v18  ;;  %v344_v34 = vadd.f32 %v328_v27, %v188_v31  ;;  %v535_v35 = vpack.c.bf16 %v188_v31, %v186_v19 }
  0xae   :  { %363 = vst [vmem:[#allocation6 + $0x40] sm:$0xff] %v347_v28 }
  0xaf   :  { %367 = vst [vmem:[#allocation6 + $0x60] sm:$0xff] %v351_v29 }
  0xb0   :  { %356 = vst [vmem:[#allocation6 + $0x8] sm:$0xff] %v340_v32 }
  0xb1   :  { %526 = vst [vmem:[#allocation7] sm:$0xff] %v525_v33  }
  0xb2   :  { %360 = vst [vmem:[#allocation6 + $0x28] sm:$0xff] %v344_v34 }
  0xb3   :  { %563 = vst [vmem:[#allocation7 + $0x10] sm:$0xff] %v535_v35   ;;  %v198_v38 = vpop.f32.mrf.mxu2  ;;  %v208_v39 = vpop.f32.mrf.mxu3 }
  0xb4   :  { %v348_v41 = vadd.f32 %v332_v36, %v198_v38  ;;  %v545_v42 = vpack.c.bf16 %v198_v38, %v196_v25  ;;  %v352_v43 = vadd.f32 %v336_v37, %v208_v39  ;;  %v181_v44 = vpop.f32.mrf.mxu0  ;;  %v191_v45 = vpop.f32.mrf.mxu1  ;;  %v555_v47 = vpack.c.bf16 %v208_v39, %v206_v26 }
  0xb5   :  { %v341_v48 = vadd.f32 %v325_v40, %v181_v44  ;;  %v345_v49 = vadd.f32 %v329_v46, %v191_v45 }
  0xb6   :  { %364 = vst [vmem:[#allocation6 + $0x48] sm:$0xff] %v348_v41 }
  0xb7   :  { %565 = vst [vmem:[#allocation7 + $0x20] sm:$0xff] %v545_v42  }
  0xb8   :  { %368 = vst [vmem:[#allocation6 + $0x68] sm:$0xff] %v352_v43 }
  0xb9   :  { %567 = vst [vmem:[#allocation7 + $0x30] sm:$0xff] %v555_v47  }
  0xba   :  { %357 = vst [vmem:[#allocation6 + $0x10] sm:$0xff] %v341_v48 }
  0xbb   :  { %361 = vst [vmem:[#allocation6 + $0x30] sm:$0xff] %v345_v49  ;;  %v201_v53 = vpop.f32.mrf.mxu2  ;;  %v211_v54 = vpop.f32.mrf.mxu3 }
  0xbc   :  { %v349_v56 = vadd.f32 %v333_v50, %v201_v53  ;;  %v353_v57 = vadd.f32 %v337_v51, %v211_v54  ;;  %v183_v58 = vpop.f32.mrf.mxu0  ;;  %v193_v59 = vpop.f32.mrf.mxu1 }
  0xbd   :  { %v342_v60 = vadd.f32 %v326_v52, %v183_v58  ;;  %v530_v61 = vpack.c.bf16 %v183_v58, %v181_v44  ;;  %v346_v62 = vadd.f32 %v330_v55, %v193_v59  ;;  %v540_v63 = vpack.c.bf16 %v193_v59, %v191_v45 }
  0xbe   :  { %365 = vst [vmem:[#allocation6 + $0x50] sm:$0xff] %v349_v56 }
  0xbf   :  { %369 = vst [vmem:[#allocation6 + $0x70] sm:$0xff] %v353_v57 }
  0xc0   :  { %358 = vst [vmem:[#allocation6 + $0x18] sm:$0xff] %v342_v60 }
  0xc1   :  { %562 = vst [vmem:[#allocation7 + $0x8] sm:$0xff] %v530_v61  }
  0xc2   :  { %362 = vst [vmem:[#allocation6 + $0x38] sm:$0xff] %v346_v62 }
  0xc3   :  { %564 = vst [vmem:[#allocation7 + $0x18] sm:$0xff] %v540_v63   ;;  %v203_v2 = vpop.f32.mrf.mxu2  ;;  %v213_v3 = vpop.f32.mrf.mxu3 }
  0xc4   :  { %v350_v4 = vadd.f32 %v334_v0, %v203_v2  ;;  %v550_v5 = vpack.c.bf16 %v203_v2, %v201_v53  ;;  %v354_v6 = vadd.f32 %v338_v1, %v213_v3  ;;  %v560_v7 = vpack.c.bf16 %v213_v3, %v211_v54 }
  0xc6   :  { %366 = vst [vmem:[#allocation6 + $0x58] sm:$0xff] %v350_v4 }
  0xc7   :  { %566 = vst [vmem:[#allocation7 + $0x28] sm:$0xff] %v550_v5  }
  0xc8   :  { %370 = vst [vmem:[#allocation6 + $0x78] sm:$0xff] %v354_v6 }
  0xc9   :  { %568 = vst [vmem:[#allocation7 + $0x38] sm:$0xff] %v560_v7   ;;  %415 = dma.vmem_to_hbm [thread:$0]  %s408_s27, 2048, %s410_s30, [#allocation5], %s679_s20, %s679_s20, %s680_s21  }
  0xca   :  { %428 = dma.vmem_to_hbm [thread:$0]  %s421_s6, 1024, %s423_s9, [#allocation8], %s683_s3, %s683_s3, %s684_s10  }
  0xcb   :  { %674 = dma.done.wait [#allocation5], 2048  }
  0xcc   :  { %675 = vsyncadd [#allocation5], 4294965248 }
  0xcd   :  { %676 = dma.done.wait [#allocation8], 1024  }
  0xce   :  { %677 = vsyncadd [#allocation8], 4294966272 }
  0xcf   :  { %437 = vsyncpa [#allocation4], 1 }
  0xd0   :  { %438 = vsyncpa [#allocation5], 1 }
  0xd1   :  { %439 = vsyncpa [#allocation8], 1 }

</bundles_post_ra>
